<compile_context>
chip_gen: v7x
topology: tpu7x:2x2x1
jax: 0.10.0
libtpu: 0.0.40
codegen_flags: <defaults>
</compile_context>

<pallas_src>
import math
import jax
import jax.numpy as jnp
from jax.experimental import pallas as pl
from jax.experimental.pallas import tpu as pltpu


# --------------------------------------------------------------------------
# Kernel
# --------------------------------------------------------------------------
def gru_cell_kernel(xh_ref, w_ref, b_ref, h_ref, out_ref,
                    acc_r_ref, acc_i_ref, acc_n_ref):
    """One (TB, TN) output tile; K axis (pl.program_id(2)) is the reduction.

    xh_ref : (TB, TK)     compute dtype (bf16)   -- [x | hidden] slab
    w_ref  : (3, TK, TN)  compute dtype (bf16)   -- per-gate fused weights
    b_ref  : (3, 1, TN)   f32                    -- fused bias bx + bh
    h_ref  : (TB, TN)     input dtype            -- hidden (for the epilogue)
    out_ref: (TB, TN)
    acc_*  : (TB, TN)     f32 VMEM accumulators (persist across K steps)
    """
    k = pl.program_id(2)

    @pl.when(k == 0)
    def _init():
        acc_r_ref[...] = jnp.zeros_like(acc_r_ref)
        acc_i_ref[...] = jnp.zeros_like(acc_i_ref)
        acc_n_ref[...] = jnp.zeros_like(acc_n_ref)

    xh = xh_ref[...]
    # Three (TB,TK)@(TK,TN) MXU passes -> same MXU work as one (TB,TK)@(TK,3TN),
    # but each gate stays in its own lane-aligned block (no 3H-wide slicing).
    acc_r_ref[...] += jnp.dot(xh, w_ref[0], preferred_element_type=jnp.float32)
    acc_i_ref[...] += jnp.dot(xh, w_ref[1], preferred_element_type=jnp.float32)
    acc_n_ref[...] += jnp.dot(xh, w_ref[2], preferred_element_type=jnp.float32)

    @pl.when(k == pl.num_programs(2) - 1)
    def _finalize():
        # Fused bias (bx + bh) added once; gate math in f32 on VPU/EUP.
        resetgate = jax.nn.sigmoid(acc_r_ref[...] + b_ref[0])
        inputgate = jax.nn.sigmoid(acc_i_ref[...] + b_ref[1])
        # Exact reference semantics: tanh(i_n + (resetgate + h_n));
        # acc_n already holds i_n + h_n (pre-bias).
        newgate = jnp.tanh(acc_n_ref[...] + b_ref[2] + resetgate)
        hidden = h_ref[...].astype(jnp.float32)
        hy = newgate + inputgate * (hidden - newgate)
        out_ref[...] = hy.astype(out_ref.dtype)


# --------------------------------------------------------------------------
# Parameter packing (done ONCE, hoisted out of the per-timestep path)
# --------------------------------------------------------------------------
def pack_gru_params(w_x2h, b_x2h, w_h2h, b_h2h, compute_dtype=jnp.bfloat16):
    """Pack PyTorch-layout GRUCell params for the fused kernel.

    w_x2h: (3H, input_size), w_h2h: (3H, H), b_*: (3H,)
    Returns:
      w_packed: (3, input_size + H, H) in compute_dtype (per-gate, lane-aligned)
      b_packed: (3, 1, H) float32 (fused bias bx + bh)
    """
    input_size = w_x2h.shape[1]
    H = w_h2h.shape[1]
    # [x | h] @ W_fused   with  W_fused = concat(w_x2h.T, w_h2h.T) : (K, 3H)
    w_fused = jnp.concatenate([w_x2h.T, w_h2h.T], axis=0)
    # Split the 3H columns into per-gate slabs: [g, k, n] = W_fused[k, g*H + n]
    w_packed = w_fused.reshape(input_size + H, 3, H).transpose(1, 0, 2)
    b_packed = (b_x2h + b_h2h).astype(jnp.float32).reshape(3, 1, H)
    return w_packed.astype(compute_dtype), b_packed


def _pick_tile(dim, pref):
    """Use the preferred tile if it divides the dim, else fall back to the
    full (untiled) extent -- always legal for BlockSpec."""
    return pref if dim % pref == 0 else dim


# --------------------------------------------------------------------------
# Wrapper
# --------------------------------------------------------------------------
def gru_cell(x, hidden, w_packed, b_packed, *,
             block_b=256, block_n=256, block_k=512):
    """x: (B, input_size), hidden: (B, H); packed params from pack_gru_params.
    Returns hy: (B, H) in hidden.dtype."""
    B, input_size = x.shape
    H = hidden.shape[1]
    K = input_size + H
    compute_dtype = w_packed.dtype

    # Activations join the bf16 matmul path; hidden stays in its own dtype
    # for the f32 epilogue (hy depends on hidden directly).
    xh = jnp.concatenate([x, hidden], axis=1).astype(compute_dtype)  # (B, K)

    tb = _pick_tile(B, block_b)
    tn = _pick_tile(H, block_n)
    tk = _pick_tile(K, block_k)
    grid = (B // tb, H // tn, K // tk)

    return pl.pallas_call(
        gru_cell_kernel,
        out_shape=jax.ShapeDtypeStruct((B, H), hidden.dtype),
        grid_spec=pltpu.PrefetchScalarGridSpec(
            num_scalar_prefetch=0,
            grid=grid,
            in_specs=[
                pl.BlockSpec((tb, tk), lambda bi, ni, ki: (bi, ki)),        # xh
                pl.BlockSpec((3, tk, tn), lambda bi, ni, ki: (0, ki, ni)),  # W
                pl.BlockSpec((3, 1, tn), lambda bi, ni, ki: (0, 0, ni)),    # bias
                pl.BlockSpec((tb, tn), lambda bi, ni, ki: (bi, ni)),        # hidden
            ],
            out_specs=pl.BlockSpec((tb, tn), lambda bi, ni, ki: (bi, ni)),
            scratch_shapes=[
                pltpu.VMEM((tb, tn), jnp.float32),   # acc_r
                pltpu.VMEM((tb, tn), jnp.float32),   # acc_i
                pltpu.VMEM((tb, tn), jnp.float32),   # acc_n
            ],
        ),
        compiler_params=pltpu.CompilerParams(
            dimension_semantics=("parallel", "parallel", "arbitrary"),
            vmem_limit_bytes=48 * 1024 * 1024,  # fits v5e/v6e (128 MiB) and v7x (64 MiB)
        ),
    )(xh, w_packed, b_packed, hidden)


# --------------------------------------------------------------------------
# Pure-JAX reference mirroring the PyTorch forward
# --------------------------------------------------------------------------
def gru_cell_ref(x, hidden, w_x2h, b_x2h, w_h2h, b_h2h,
                 compute_dtype=jnp.float32):
    H = hidden.shape[1]
    gate_x = jnp.dot(x.astype(compute_dtype), w_x2h.T.astype(compute_dtype),
                     preferred_element_type=jnp.float32) + b_x2h
    gate_h = jnp.dot(hidden.astype(compute_dtype), w_h2h.T.astype(compute_dtype),
                     preferred_element_type=jnp.float32) + b_h2h
    i_r, i_i, i_n = gate_x[:, :H], gate_x[:, H:2 * H], gate_x[:, 2 * H:]
    h_r, h_i, h_n = gate_h[:, :H], gate_h[:, H:2 * H], gate_h[:, 2 * H:]
    resetgate = jax.nn.sigmoid(i_r + h_r)
    inputgate = jax.nn.sigmoid(i_i + h_i)
    newgate = jnp.tanh(i_n + (resetgate + h_n))
    return newgate + inputgate * (hidden - newgate)


# --------------------------------------------------------------------------
if __name__ == "__main__":
    # Small shapes consistent with the module: batch=2, input_size=16, hidden=32
    B, INPUT_SIZE, HIDDEN_SIZE = 2, 16, 32

    key = jax.random.PRNGKey(0)
    k_x, k_h, k_wx, k_bx, k_wh, k_bh = jax.random.split(key, 6)

    # Deterministic init: uniform(-std, std), std = 1/sqrt(hidden)
    std = 1.0 / math.sqrt(HIDDEN_SIZE)
    w_x2h = jax.random.uniform(k_wx, (3 * HIDDEN_SIZE, INPUT_SIZE),
                               jnp.float32, -std, std)
    b_x2h = jax.random.uniform(k_bx, (3 * HIDDEN_SIZE,), jnp.float32, -std, std)
    w_h2h = jax.random.uniform(k_wh, (3 * HIDDEN_SIZE, HIDDEN_SIZE),
                               jnp.float32, -std, std)
    b_h2h = jax.random.uniform(k_bh, (3 * HIDDEN_SIZE,), jnp.float32, -std, std)

    x = jax.random.normal(k_x, (B, INPUT_SIZE), jnp.float32)
    hidden = jax.random.normal(k_h, (B, HIDDEN_SIZE), jnp.float32)

    # Pack once: transposes / concat / bf16 cast are hoisted out of the
    # per-timestep path (a recurrent caller reuses w_packed/b_packed).
    w_packed, b_packed = pack_gru_params(w_x2h, b_x2h, w_h2h, b_h2h,
                                         compute_dtype=jnp.bfloat16)

    gru_step = jax.jit(gru_cell)
    hy = gru_step(x, hidden, w_packed, b_packed)
    jax.block_until_ready(hy)
    assert hy.shape == (B, HIDDEN_SIZE)

    # Check against a reference that also does the matmul in bf16 (tight), and
    # against the pure-f32 reference (bf16-level tolerance).
    hy_ref_bf16 = gru_cell_ref(x, hidden, w_x2h, b_x2h, w_h2h, b_h2h,
                               compute_dtype=jnp.bfloat16)
    hy_ref_f32 = gru_cell_ref(x, hidden, w_x2h, b_x2h, w_h2h, b_h2h,
                              compute_dtype=jnp.float32)
    assert jnp.allclose(hy, hy_ref_bf16, atol=2e-3, rtol=2e-3), \
        "mismatch vs bf16-matched reference"
    assert jnp.allclose(hy, hy_ref_f32, atol=3e-2, rtol=3e-2), \
        "mismatch vs f32 reference"

    print("KERNEL_OK")
</pallas_src>

<mosaic_0001>
module attributes {stable_mosaic.version = 11 : i64} {
  func.func @gru_cell_kernel(%arg0: i32, %arg1: i32, %arg2: i32, %arg3: memref<2x48xbf16, #tpu.memory_space<vmem>>, %arg4: memref<3x48x32xbf16, #tpu.memory_space<vmem>>, %arg5: memref<3x1x32xf32, #tpu.memory_space<vmem>>, %arg6: memref<2x32xf32, #tpu.memory_space<vmem>>, %arg7: memref<2x32xf32, #tpu.memory_space<vmem>>, %arg8: memref<2x32xf32, #tpu.memory_space<vmem>>, %arg9: memref<2x32xf32, #tpu.memory_space<vmem>>, %arg10: memref<2x32xf32, #tpu.memory_space<vmem>>) attributes {dimension_semantics = [#tpu.dimension_semantics<parallel>, #tpu.dimension_semantics<parallel>, #tpu.dimension_semantics<arbitrary>], iteration_bounds = array<i64: 1, 1, 1>, scalar_prefetch = 0 : i64, scratch_operands = 3 : i64, tpu.core_type = #tpu.core_type<tc>, window_params = [{transform_indices = @transform_0, window_bounds = array<i64: 2, 48>}, {transform_indices = @transform_1, window_bounds = array<i64: 3, 48, 32>}, {transform_indices = @transform_2, window_bounds = array<i64: 3, 1, 32>}, {transform_indices = @transform_3, window_bounds = array<i64: 2, 32>}, {transform_indices = @transform_4, window_bounds = array<i64: 2, 32>}]} {
    %c0_i32 = arith.constant 0 : i32
    %0 = arith.cmpi eq, %arg2, %c0_i32 : i32
    %1 = arith.extui %0 : i1 to i32
    %c0_i32_0 = arith.constant 0 : i32
    %2 = arith.cmpi ne, %1, %c0_i32_0 : i32
    scf.if %2 {
      %cst_25 = arith.constant 0.000000e+00 : f32
      %25 = vector.broadcast %cst_25 : f32 to vector<2x32xf32>
      %c0_26 = arith.constant 0 : index
      %c0_27 = arith.constant 0 : index
      %26 = vector.load %arg8[%c0_26, %c0_27] : memref<2x32xf32, #tpu.memory_space<vmem>>, vector<2x32xf32>
      tpu.vector_store %arg8[%c0_26, %c0_27], %25 {strides = array<i32>} : memref<2x32xf32, #tpu.memory_space<vmem>>, vector<2x32xf32>,
      %cst_28 = arith.constant 0.000000e+00 : f32
      %27 = vector.broadcast %cst_28 : f32 to vector<2x32xf32>
      %c0_29 = arith.constant 0 : index
      %c0_30 = arith.constant 0 : index
      %28 = vector.load %arg9[%c0_29, %c0_30] : memref<2x32xf32, #tpu.memory_space<vmem>>, vector<2x32xf32>
      tpu.vector_store %arg9[%c0_29, %c0_30], %27 {strides = array<i32>} : memref<2x32xf32, #tpu.memory_space<vmem>>, vector<2x32xf32>,
      %cst_31 = arith.constant 0.000000e+00 : f32
      %29 = vector.broadcast %cst_31 : f32 to vector<2x32xf32>
      %c0_32 = arith.constant 0 : index
      %c0_33 = arith.constant 0 : index
      %30 = vector.load %arg10[%c0_32, %c0_33] : memref<2x32xf32, #tpu.memory_space<vmem>>, vector<2x32xf32>
      tpu.vector_store %arg10[%c0_32, %c0_33], %29 {strides = array<i32>} : memref<2x32xf32, #tpu.memory_space<vmem>>, vector<2x32xf32>,
    } else {
    }
    %c0 = arith.constant 0 : index
    %c0_1 = arith.constant 0 : index
    %3 = vector.load %arg3[%c0, %c0_1] : memref<2x48xbf16, #tpu.memory_space<vmem>>, vector<2x48xbf16>
    %c0_2 = arith.constant 0 : index
    %c0_3 = arith.constant 0 : index
    %4 = vector.load %arg8[%c0_2, %c0_3] : memref<2x32xf32, #tpu.memory_space<vmem>>, vector<2x32xf32>
    %c0_4 = arith.constant 0 : index
    %c0_5 = arith.constant 0 : index
    %c0_6 = arith.constant 0 : index
    %5 = vector.load %arg4[%c0_4, %c0_5, %c0_6] : memref<3x48x32xbf16, #tpu.memory_space<vmem>>, vector<1x48x32xbf16>
    %6 = vector.shape_cast %5 : vector<1x48x32xbf16> to vector<48x32xbf16>
    %cst = arith.constant dense<0.000000e+00> : vector<2x32xf32>
    %7 = tpu.matmul %3, %6, %cst {dimension_numbers = #tpu.dot_dimension_numbers<[1], [0], [0], [1], [0, 0, 1, 1], [], []>} : vector<2x48xbf16>, vector<48x32xbf16>, vector<2x32xf32> -> vector<2x32xf32>
    %8 = arith.addf %4, %7 : vector<2x32xf32>
    %c0_7 = arith.constant 0 : index
    %c0_8 = arith.constant 0 : index
    %9 = vector.load %arg8[%c0_7, %c0_8] : memref<2x32xf32, #tpu.memory_space<vmem>>, vector<2x32xf32>
    tpu.vector_store %arg8[%c0_7, %c0_8], %8 {strides = array<i32>} : memref<2x32xf32, #tpu.memory_space<vmem>>, vector<2x32xf32>,
    %c0_9 = arith.constant 0 : index
    %c0_10 = arith.constant 0 : index
    %10 = vector.load %arg9[%c0_9, %c0_10] : memref<2x32xf32, #tpu.memory_space<vmem>>, vector<2x32xf32>
    %c1 = arith.constant 1 : index
    %c0_11 = arith.constant 0 : index
    %c0_12 = arith.constant 0 : index
    %11 = vector.load %arg4[%c1, %c0_11, %c0_12] : memref<3x48x32xbf16, #tpu.memory_space<vmem>>, vector<1x48x32xbf16>
    %12 = vector.shape_cast %11 : vector<1x48x32xbf16> to vector<48x32xbf16>
    %cst_13 = arith.constant dense<0.000000e+00> : vector<2x32xf32>
    %13 = tpu.matmul %3, %12, %cst_13 {dimension_numbers = #tpu.dot_dimension_numbers<[1], [0], [0], [1], [0, 0, 1, 1], [], []>} : vector<2x48xbf16>, vector<48x32xbf16>, vector<2x32xf32> -> vector<2x32xf32>
    %14 = arith.addf %10, %13 : vector<2x32xf32>
    %c0_14 = arith.constant 0 : index
    %c0_15 = arith.constant 0 : index
    %15 = vector.load %arg9[%c0_14, %c0_15] : memref<2x32xf32, #tpu.memory_space<vmem>>, vector<2x32xf32>
    tpu.vector_store %arg9[%c0_14, %c0_15], %14 {strides = array<i32>} : memref<2x32xf32, #tpu.memory_space<vmem>>, vector<2x32xf32>,
    %c0_16 = arith.constant 0 : index
    %c0_17 = arith.constant 0 : index
    %16 = vector.load %arg10[%c0_16, %c0_17] : memref<2x32xf32, #tpu.memory_space<vmem>>, vector<2x32xf32>
    %c2 = arith.constant 2 : index
    %c0_18 = arith.constant 0 : index
    %c0_19 = arith.constant 0 : index
    %17 = vector.load %arg4[%c2, %c0_18, %c0_19] : memref<3x48x32xbf16, #tpu.memory_space<vmem>>, vector<1x48x32xbf16>
    %18 = vector.shape_cast %17 : vector<1x48x32xbf16> to vector<48x32xbf16>
    %cst_20 = arith.constant dense<0.000000e+00> : vector<2x32xf32>
    %19 = tpu.matmul %3, %18, %cst_20 {dimension_numbers = #tpu.dot_dimension_numbers<[1], [0], [0], [1], [0, 0, 1, 1], [], []>} : vector<2x48xbf16>, vector<48x32xbf16>, vector<2x32xf32> -> vector<2x32xf32>
    %20 = arith.addf %16, %19 : vector<2x32xf32>
    %c0_21 = arith.constant 0 : index
    %c0_22 = arith.constant 0 : index
    %21 = vector.load %arg10[%c0_21, %c0_22] : memref<2x32xf32, #tpu.memory_space<vmem>>, vector<2x32xf32>
    tpu.vector_store %arg10[%c0_21, %c0_22], %20 {strides = array<i32>} : memref<2x32xf32, #tpu.memory_space<vmem>>, vector<2x32xf32>,
    %c0_i32_23 = arith.constant 0 : i32
    %22 = arith.cmpi eq, %arg2, %c0_i32_23 : i32
    %23 = arith.extui %22 : i1 to i32
    %c0_i32_24 = arith.constant 0 : i32
    %24 = arith.cmpi ne, %23, %c0_i32_24 : i32
    scf.if %24 {
      %c0_25 = arith.constant 0 : index
      %c0_26 = arith.constant 0 : index
      %25 = vector.load %arg8[%c0_25, %c0_26] : memref<2x32xf32, #tpu.memory_space<vmem>>, vector<2x32xf32>
      %c0_27 = arith.constant 0 : index
      %c0_28 = arith.constant 0 : index
      %c0_29 = arith.constant 0 : index
      %26 = vector.load %arg5[%c0_27, %c0_28, %c0_29] : memref<3x1x32xf32, #tpu.memory_space<vmem>>, vector<1x1x32xf32>
      %27 = vector.shape_cast %26 : vector<1x1x32xf32> to vector<1x32xf32>
      %28 = vector.broadcast %27 : vector<1x32xf32> to vector<2x32xf32>
      %29 = arith.addf %25, %28 : vector<2x32xf32>
      %30 = arith.negf %29 : vector<2x32xf32>
      %31 = math.exp %30 : vector<2x32xf32>
      %cst_30 = arith.constant 1.000000e+00 : f32
      %32 = vector.broadcast %cst_30 : f32 to vector<2x32xf32>
      %33 = arith.addf %32, %31 : vector<2x32xf32>
      %34 = arith.divf %32, %33 : vector<2x32xf32>
      %c0_31 = arith.constant 0 : index
      %c0_32 = arith.constant 0 : index
      %35 = vector.load %arg9[%c0_31, %c0_32] : memref<2x32xf32, #tpu.memory_space<vmem>>, vector<2x32xf32>
      %c1_33 = arith.constant 1 : index
      %c0_34 = arith.constant 0 : index
      %c0_35 = arith.constant 0 : index
      %36 = vector.load %arg5[%c1_33, %c0_34, %c0_35] : memref<3x1x32xf32, #tpu.memory_space<vmem>>, vector<1x1x32xf32>
      %37 = vector.shape_cast %36 : vector<1x1x32xf32> to vector<1x32xf32>
      %38 = vector.broadcast %37 : vector<1x32xf32> to vector<2x32xf32>
      %39 = arith.addf %35, %38 : vector<2x32xf32>
      %40 = arith.negf %39 : vector<2x32xf32>
      %41 = math.exp %40 : vector<2x32xf32>
      %cst_36 = arith.constant 1.000000e+00 : f32
      %42 = vector.broadcast %cst_36 : f32 to vector<2x32xf32>
      %43 = arith.addf %42, %41 : vector<2x32xf32>
      %44 = arith.divf %42, %43 : vector<2x32xf32>
      %c0_37 = arith.constant 0 : index
      %c0_38 = arith.constant 0 : index
      %45 = vector.load %arg10[%c0_37, %c0_38] : memref<2x32xf32, #tpu.memory_space<vmem>>, vector<2x32xf32>
      %c2_39 = arith.constant 2 : index
      %c0_40 = arith.constant 0 : index
      %c0_41 = arith.constant 0 : index
      %46 = vector.load %arg5[%c2_39, %c0_40, %c0_41] : memref<3x1x32xf32, #tpu.memory_space<vmem>>, vector<1x1x32xf32>
      %47 = vector.shape_cast %46 : vector<1x1x32xf32> to vector<1x32xf32>
      %48 = vector.broadcast %47 : vector<1x32xf32> to vector<2x32xf32>
      %49 = arith.addf %45, %48 : vector<2x32xf32>
      %50 = arith.addf %49, %34 : vector<2x32xf32>
      %51 = math.tanh %50 : vector<2x32xf32>
      %c0_42 = arith.constant 0 : index
      %c0_43 = arith.constant 0 : index
      %52 = vector.load %arg6[%c0_42, %c0_43] : memref<2x32xf32, #tpu.memory_space<vmem>>, vector<2x32xf32>
      %53 = arith.subf %52, %51 : vector<2x32xf32>
      %54 = arith.mulf %44, %53 : vector<2x32xf32>
      %55 = arith.addf %51, %54 : vector<2x32xf32>
      %c0_44 = arith.constant 0 : index
      %c0_45 = arith.constant 0 : index
      %56 = vector.load %arg7[%c0_44, %c0_45] : memref<2x32xf32, #tpu.memory_space<vmem>>, vector<2x32xf32>
      tpu.vector_store %arg7[%c0_44, %c0_45], %55 {strides = array<i32>} : memref<2x32xf32, #tpu.memory_space<vmem>>, vector<2x32xf32>,
    } else {
    }
    return
  }
  func.func @transform_0(%arg0: i32, %arg1: i32, %arg2: i32) -> (i32, i32) {
    %c0_i32 = arith.constant 0 : i32
    return %arg0, %arg2 : i32, i32
  }
  func.func @transform_1(%arg0: i32, %arg1: i32, %arg2: i32) -> (i32, i32, i32) {
    %c0_i32 = arith.constant 0 : i32
    %c0_i32_0 = arith.constant 0 : i32
    return %c0_i32, %arg2, %arg1 : i32, i32, i32
  }
  func.func @transform_2(%arg0: i32, %arg1: i32, %arg2: i32) -> (i32, i32, i32) {
    %c0_i32 = arith.constant 0 : i32
    %c0_i32_0 = arith.constant 0 : i32
    %c0_i32_1 = arith.constant 0 : i32
    return %c0_i32, %c0_i32_0, %arg1 : i32, i32, i32
  }
  func.func @transform_3(%arg0: i32, %arg1: i32, %arg2: i32) -> (i32, i32) {
    %c0_i32 = arith.constant 0 : i32
    return %arg0, %arg1 : i32, i32
  }
  func.func @transform_4(%arg0: i32, %arg1: i32, %arg2: i32) -> (i32, i32) {
    %c0_i32 = arith.constant 0 : i32
    return %arg0, %arg1 : i32, i32
  }
}

</mosaic_0001>

<bundles_post_ra>
// kernel: gru_cell.1
= control target key start
LH: loop header
LB: loop body
LE: loop exit
PB: predicated region body
PF: predicated region fallthrough
CT: control target
= control target key end

     0   :  { %v420_v1 = vmov 0.0   ;;  %vm421_vm0 = vmmov 0   ;;  %vm23_vm1 = vcmask 254976   ;;  %s515_s0 = inlined_call_operand.vmem [shape: bf16[2,48], index: 0, kind: input, shape index: {}]   ;;  %s516_s1 = inlined_call_operand.vmem [shape: bf16[3,48,32], index: 1, kind: input, shape index: {}]   ;;  %s517_s2 = inlined_call_operand.vmem [shape: f32[3,1,32], index: 2, kind: input, shape index: {}]   ;;  %s518_s3 = inlined_call_operand.vmem [shape: f32[2,32], index: 3, kind: input, shape index: {}]   ;;  %s519_s4 = inlined_call_operand.hbm [shape: f32[2,32], index: 4, kind: output, shape index: {}]  }
   0x1   :  { %v377_v0 = vld [vmem:[%s516_s1] sm:$0xff]   ;;  %344 = vmatprep.subr.bf16.mxu0 %v420_v1  ;;  %354 = vmatprep.subr.bf16.mxu1 %v420_v1  ;;  %v378_v2 = vld [vmem:[%s516_s1 + $0x8] sm:$0xff]   ;;  %v380_v3 = vld [vmem:[%s516_s1 + $0x18] sm:$0xff]   ;;  %24 = vst.msk [vmem:[#allocation2] sm:$0x3] %vm23_vm1, %v420_v1 }
   0x2   :  { %345 = vmatpush3.bf16.msra.mxu0 %v377_v0  ;;  %350 = vmatprep.mubr.msk.bf16.mxu0 %vm421_vm0, %v420_v1  ;;  %v379_v4 = vld [vmem:[%s516_s1 + $0x10] sm:$0xff]   ;;  %25 = vst.msk [vmem:[#allocation3] sm:$0x3] %vm23_vm1, %v420_v1  ;;  %26 = vst.msk [vmem:[#allocation4] sm:$0x3] %vm23_vm1, %v420_v1  ;;  %v381_v5 = vld [vmem:[%s516_s1 + $0x20] sm:$0xff]  }
   0x3   :  { %346 = vmatprep.subr.bf16.mxu0 %v420_v1  ;;  %360 = vmatprep.mubr.msk.bf16.mxu1 %vm421_vm0, %v420_v1 }
   0x4   :  { %355 = vmatpush3.bf16.msra.mxu1 %v380_v3 }
   0x5   :  { %356 = vmatprep.subr.bf16.mxu1 %v420_v1 }
   0x6   :  { %347 = vmatpush3.bf16.msra.mxu0 %v378_v2 }
   0x7   :  { %348 = vmatprep.subr.bf16.mxu0 %v420_v1 }
   0x8   :  { %9 = vsyncpa [#allocation6], 0  ;;  %v27_v6 = vld [vmem:[%s515_s0] sm:$0x1]  ;;  %vm53_vm2 = vcmask 392192   ;;  %357 = vmatpush3.bf16.msra.mxu1 %v381_v5  ;;  %v382_v7 = vld [vmem:[%s516_s1 + $0x28] sm:$0xff]  }
   0x9   :  { %v383_v8 = vld [vmem:[%s516_s1 + $0x30] sm:$0xff]   ;;  %358 = vmatprep.subr.bf16.mxu1 %v420_v1  ;;  %v384_v9 = vld [vmem:[%s516_s1 + $0x38] sm:$0xff]   ;;  %v385_v10 = vld [vmem:[%s516_s1 + $0x40] sm:$0xff]   ;;  %s422_s15 = smov [#allocation5]  }
   0xa   :  { %349 = vmatpush3.bf16.msra.mxu0 %v379_v4  ;;  %v28_v11 = vld [vmem:[#allocation2] sm:$0x3]  ;;  %v100_v16 = vld [vmem:[#allocation3] sm:$0x3]  ;;  %v168_v24 = vld [vmem:[#allocation4] sm:$0x3] }
   0xb   :  { %364 = vmatprep.subr.bf16.mxu0 %v420_v1  ;;  %v325_v23 = vld [vmem:[%s517_s2] ss:$0 sm:$0xff]  ;;  %v328_v28 = vld [vmem:[%s517_s2 + $0x1] ss:$0 sm:$0xff]  ;;  %v331_v40 = vld [vmem:[%s517_s2 + $0x2] ss:$0 sm:$0xff] }
   0xc   :  { %359 = vmatpush3.bf16.msra.mxu1 %v382_v7  ;;  %v282_v46 = vld [vmem:[%s518_s3] sm:$0x3]  ;;  %s293_s16 = sshll.u32 %s422_s15, 4  ;;  %s294_s16 = int_to_ptr.vmem [resolvable:$true] %s293_s16 }
   0xd   :  { %351 = vmatmul.mubr.msk.bf16.vlgmr.msra.gmra.mrb[0].mxu0 %vm53_vm2, %v27_v6  ;;  %s396_s2 = scalar_lea.vmem %s294_s16, 32  ;;  %p401_p1 = scmp.lt.s32.totalorder %s294_s16, %s294_s16 }
   0xe   :  { %365 = vmatpush3.bf16.msra.mxu0 %v383_v8  ;;  %370 = vmatprep.mubr.msk.bf16.mxu0 %vm421_vm0, %v420_v1  ;;  %p397_p0 = scmp.ne.s32.totalorder %s294_s16, %s396_s2  ;;  %p402_p2 = scmp.lt.s32.totalorder %s396_s2, %s396_s2 }
   0xf   :  { %366 = vmatprep.subr.bf16.mxu0 %v420_v1  ;;  %361 = vmatmul.mubr.msk.bf16.vlgmr.msra.gmra.mrb[0].mxu1 %vm53_vm2, %v27_v6 }
  0x10   :  { %p403_p3 = por %p402_p2, %p401_p1 }
  0x12   :  { %367 = vmatpush3.bf16.msra.mxu0 %v384_v9  ;;  %p404_p4 = pnand %p403_p3, %p397_p0 }
  0x13   :  { %368 = vmatprep.subr.bf16.mxu0 %v420_v1 }
  0x16   :  { %369 = vmatpush3.bf16.msra.mxu0 %v385_v10 }
  0x19   :  { %371 = vmatmul.mubr.msk.bf16.vlgmr.msra.gmra.mrb[4].mxu0 %vm53_vm2, %v27_v6 }
  0xe0   :  { %v91_v12 = vpop.f32.mrb[0].mxu0 }
  0xe1   :  { %v97_v13 = vadd.f32 %v91_v12, %v28_v11  ;;  %v352_v14 = vpop.f32.mrb[1].mxu0 }
  0xe2   :  { %v94_v15 = vpop.f32.mrb[2].mxu0  ;;  %v160_v18 = vpop.f32.mrb[0].mxu1 }
  0xe3   :  { %99 = vst.msk [vmem:[#allocation2] sm:$0x3] %vm23_vm1, %v97_v13  ;;  %v353_v17 = vpop.f32.mrb[3].mxu0  ;;  %v166_v19 = vadd.f32 %v160_v18, %v100_v16  ;;  %v362_v20 = vpop.f32.mrb[1].mxu1 }
  0xe4   :  { %v163_v21 = vpop.f32.mrb[2].mxu1 }
  0xe5   :  { %167 = vst.msk [vmem:[#allocation3] sm:$0x3] %vm23_vm1, %v166_v19  ;;  %v363_v22 = vpop.f32.mrb[3].mxu1 }
  0xea   :  { %v239_v25 = vld [vmem:[#allocation2] sm:$0x3] }
  0xeb   :  { %v247_v26 = vadd.f32 %v325_v23, %v239_v25 }
  0xec   :  { %v228_v27 = vpop.f32.mrb[4].mxu0  ;;  %v254_v33 = vld [vmem:[#allocation3] sm:$0x3] }
  0xed   :  { %v234_v29 = vadd.f32 %v228_v27, %v168_v24  ;;  %v372_v30 = vpop.f32.mrb[5].mxu0  ;;  %v326_v31 = vmul.f32 -1.442695, %v247_v26  ;;  %v263_v35 = vadd.f32 %v328_v28, %v254_v33 }
  0xee   :  { %v231_v32 = vpop.f32.mrb[6].mxu0 }
  0xef   :  { %235 = vst.msk [vmem:[#allocation4] sm:$0x3] %vm23_vm1, %v234_v29  ;;  %v373_v34 = vpop.f32.mrb[7].mxu0  ;;  %386 = vpow2.f32 %v326_v31  ;;  %v329_v36 = vmul.f32 -1.442695, %v263_v35 }
  0xf1   :  { %388 = vpow2.f32 %v329_v36 }
  0xf6   :  { %v270_v39 = vld [vmem:[#allocation4] sm:$0x3] }
  0xf7   :  { %v279_v42 = vadd.f32 %v331_v40, %v270_v39 }
  0xf9   :  { %v387_v37 = vpop.eup %386 }
  0xfa   :  { %v251_v38 = vadd.f32 1.0, %v387_v37 }
  0xfb   :  { %v389_v41 = vpop.eup %388 }
  0xfc   :  { %390 = vrcp.f32 %v251_v38  ;;  %v267_v43 = vadd.f32 1.0, %v389_v41 }
  0xfe   :  { %392 = vrcp.f32 %v267_v43 }
 0x106   :  { %v391_v44 = vpop.eup %390 }
 0x107   :  { %v280_v45 = vadd.f32 %v391_v44, %v279_v42 }
 0x108   :  { %v393_v47 = vpop.eup %392 }
 0x109   :  { %394 = vtanh.f32 %v280_v45 }
 0x113   :  { %v395_v48 = vpop.eup %394 }
 0x114   :  { %v283_v49 = vsub.f32 %v282_v46, %v395_v48 }
 0x116   :  { %v284_v50 = vmul.f32 %v393_v47, %v283_v49 }
 0x118   :  { %v285_v51 = vadd.f32 %v395_v48, %v284_v50 }
 0x11a   :  { %286 = vst.msk [vmem:[#allocation5] sm:$0x3] %vm23_vm1, %v285_v51 }
 0x11b   :  { %407 = shalt.err (!%p404_p4)
}
 0x11c   :  { %s408_s3 = scalar_lea.hbm %s519_s4, 32 }
 0x11d   :  { %p409_p5 = scmp.ne.s32.totalorder %s519_s4, %s408_s3  ;;  %p412_p6 = scmp.lt.u32.totalorder %s408_s3, %s519_s4 }
 0x11f   :  { %p414_p7 = pnand %p412_p6, %p409_p5 }
 0x121   :  { %417 = shalt.err (!%p414_p7)
}
 0x122   :  { %296 = dma.vmem_to_hbm [thread:$0]  %s294_s16, 32, %s519_s4, [#allocation6]  }
 0x123   :  { %418 = dma.done.wait [#allocation6], 32  }
 0x124   :  { %419 = vsyncadd [#allocation6], 4294967264 }
 0x125   :  { %300 = vsyncpa [#allocation6], 1 }

</bundles_post_ra>
